<compile_context>
chip_gen: v7x
topology: tpu7x:2x2x1
jax: 0.10.0
libtpu: 0.0.40
codegen_flags: <defaults>
</compile_context>

<pallas_src>
import functools

import jax
import jax.numpy as jnp
from jax.experimental import pallas as pl
from jax.experimental.pallas import tpu as pltpu

INPUT_DIM = 768
HIDDEN1 = 256
HIDDEN2 = 128
NUM_CLASSES = 5
NUM_CLASSES_PAD = 128        # pad to a lane-dense multiple of 128
BN_EPS = 1e-5
TB_MIN = 16                  # bf16 output tile -> sublane dim multiple of 16
TB_MAX = 1024                # keeps VMEM footprint ~8 MiB << 32 MiB limit


def _mlp_kernel(x_ref, w1_ref, b1_ref, w2_ref, b2_ref, w3_ref, b3_ref, o_ref):
    # Cast the activation to bf16 inside the kernel (x DMA stream stays f32);
    # all MXU matmuls are bf16 x bf16 with f32 accumulation.
    x = x_ref[...].astype(jnp.bfloat16)                               # (TB, 768)

    # fc1 (+ folded BN affine) + relu
    h1 = jnp.dot(x, w1_ref[...], preferred_element_type=jnp.float32) + b1_ref[...]
    h1 = jnp.maximum(h1, 0.0)
    # dropout(p=0.5): identity in eval mode
    # TODO(synk): training-mode dropout (stochastic mask via pltpu.prng_*) not implemented.

    # fc2 + relu
    h2 = jnp.dot(h1.astype(jnp.bfloat16), w2_ref[...],
                 preferred_element_type=jnp.float32) + b2_ref[...]
    h2 = jnp.maximum(h2, 0.0)

    # fc3 (output columns padded 5 -> 128; lane-dense bf16 store)
    out = jnp.dot(h2.astype(jnp.bfloat16), w3_ref[...],
                  preferred_element_type=jnp.float32) + b3_ref[...]
    o_ref[...] = out.astype(o_ref.dtype)


def prepare_params(params):
    """One-time constant folding: BN -> w1/b1, fc3 zero-pad, bf16 weights."""
    w1, b1 = params["w1"], params["b1"]
    w2, b2 = params["w2"], params["b2"]
    w3, b3 = params["w3"], params["b3"]
    gamma, beta = params["gamma"], params["beta"]
    run_mean, run_var = params["run_mean"], params["run_var"]

    inv_std = 1.0 / jnp.sqrt(run_var + BN_EPS)
    scale = gamma * inv_std                                   # (256,)
    shift = beta - run_mean * gamma * inv_std                 # (256,)

    # Fold BN affine into fc1: y = (x@w1 + b1)*scale + shift = x@(w1*scale) + (b1*scale + shift)
    w1f = w1 * scale[None, :]
    b1f = (b1 * scale + shift).reshape(1, HIDDEN1)

    w3_pad = jnp.zeros((HIDDEN2, NUM_CLASSES_PAD), jnp.float32).at[:, :NUM_CLASSES].set(w3)
    b3_pad = jnp.zeros((1, NUM_CLASSES_PAD), jnp.float32).at[:, :NUM_CLASSES].set(
        b3.reshape(1, -1))

    return dict(
        w1=w1f.astype(jnp.bfloat16), b1=b1f,
        w2=w2.astype(jnp.bfloat16), b2=b2.reshape(1, HIDDEN2),
        w3=w3_pad.astype(jnp.bfloat16), b3=b3_pad,
    )


def _choose_tb(batch):
    """Power-of-two batch tile in [16, 1024] targeting ~4 grid steps."""
    tb = TB_MIN
    while tb < TB_MAX and tb * 4 < batch:
        tb *= 2
    return tb


@functools.partial(jax.jit, static_argnames=("tb",))
def _forward_impl(x, fused, tb):
    x2d = jnp.squeeze(x, axis=1)          # (B, 768), stays f32 (no wrapper cast)
    B = x2d.shape[0]
    grid = (pl.cdiv(B, tb),)              # edge block (if any) is masked by Pallas

    const = lambda shape: pl.BlockSpec(shape, lambda i: tuple(0 for _ in shape))

    out = pl.pallas_call(
        _mlp_kernel,
        out_shape=jax.ShapeDtypeStruct((B, NUM_CLASSES_PAD), jnp.bfloat16),
        grid=grid,
        in_specs=[
            pl.BlockSpec((tb, INPUT_DIM), lambda i: (i, 0)),      # x: tiled over batch
            const((INPUT_DIM, HIDDEN1)),                          # weights: VMEM-resident
            const((1, HIDDEN1)),
            const((HIDDEN1, HIDDEN2)),
            const((1, HIDDEN2)),
            const((HIDDEN2, NUM_CLASSES_PAD)),
            const((1, NUM_CLASSES_PAD)),
        ],
        out_specs=pl.BlockSpec((tb, NUM_CLASSES_PAD), lambda i: (i, 0)),
        compiler_params=pltpu.CompilerParams(
            dimension_semantics=("parallel",),   # shard batch axis across v7x TCs
            vmem_limit_bytes=32 << 20,
        ),
    )(x2d, fused["w1"], fused["b1"], fused["w2"], fused["b2"],
      fused["w3"], fused["b3"])

    # Tiny slice+cast: (B, 128) bf16 slab -> (B, 5) f32 logits.
    return out[:, :NUM_CLASSES].astype(jnp.float32)


def audio_classifier_forward(x, fused):
    """x: (B, 1, INPUT_DIM) float32 -> (B, NUM_CLASSES) float32."""
    tb = _choose_tb(x.shape[0])
    return _forward_impl(x, fused, tb)


def init_params(key):
    ks = jax.random.split(key, 6)
    # Weights stored as (in_features, out_features) == PyTorch weight.T
    w1 = jax.random.normal(ks[0], (INPUT_DIM, HIDDEN1), jnp.float32) * 0.02
    b1 = jax.random.normal(ks[1], (HIDDEN1,), jnp.float32) * 0.01
    w2 = jax.random.normal(ks[2], (HIDDEN1, HIDDEN2), jnp.float32) * 0.02
    b2 = jax.random.normal(ks[3], (HIDDEN2,), jnp.float32) * 0.01
    w3 = jax.random.normal(ks[4], (HIDDEN2, NUM_CLASSES), jnp.float32) * 0.02
    b3 = jax.random.normal(ks[5], (NUM_CLASSES,), jnp.float32) * 0.01
    # BatchNorm1d parameters / running stats (deterministic, non-trivial).
    gamma = jnp.linspace(0.9, 1.1, HIDDEN1, dtype=jnp.float32)
    beta = jnp.linspace(-0.05, 0.05, HIDDEN1, dtype=jnp.float32)
    run_mean = jnp.linspace(-0.1, 0.1, HIDDEN1, dtype=jnp.float32)
    run_var = jnp.linspace(0.5, 1.5, HIDDEN1, dtype=jnp.float32)
    return dict(w1=w1, b1=b1, w2=w2, b2=b2, w3=w3, b3=b3,
                gamma=gamma, beta=beta, run_mean=run_mean, run_var=run_var)


def reference_forward(x, p):
    """Pure-jnp f32 reference (eval-mode PyTorch semantics)."""
    h = jnp.squeeze(x, axis=1)
    h = h @ p["w1"] + p["b1"]
    h = (h - p["run_mean"]) / jnp.sqrt(p["run_var"] + BN_EPS) * p["gamma"] + p["beta"]
    h = jnp.maximum(h, 0.0)
    h = h @ p["w2"] + p["b2"]
    h = jnp.maximum(h, 0.0)
    return h @ p["w3"] + p["b3"]


if __name__ == "__main__":
    key = jax.random.PRNGKey(0)
    xkey, pkey = jax.random.split(key)

    params = init_params(pkey)
    fused = prepare_params(params)          # one-time constant folding

    # bf16 matmuls (f32 accumulation) -> relaxed tolerance vs the f32 reference.
    tol = 2e-2

    B = 8
    x = jax.random.normal(xkey, (B, 1, INPUT_DIM), jnp.float32)
    out = jax.block_until_ready(audio_classifier_forward(x, fused))
    ref = reference_forward(x, params)
    assert out.shape == (B, NUM_CLASSES), out.shape
    assert jnp.allclose(out, ref, atol=tol, rtol=tol), \
        f"max err {jnp.max(jnp.abs(out - ref))}"

    # Ragged batch (not a multiple of the tile) -> masked edge block, no pad copy.
    B2 = 13
    x2 = jax.random.normal(jax.random.PRNGKey(1), (B2, 1, INPUT_DIM), jnp.float32)
    out2 = jax.block_until_ready(audio_classifier_forward(x2, fused))
    ref2 = reference_forward(x2, params)
    assert out2.shape == (B2, NUM_CLASSES), out2.shape
    assert jnp.allclose(out2, ref2, atol=tol, rtol=tol), \
        f"max err {jnp.max(jnp.abs(out2 - ref2))}"

    print("KERNEL_OK")
</pallas_src>

<mosaic_0001>
module attributes {stable_mosaic.version = 11 : i64} {
  func.func @_mlp_kernel(%arg0: i32, %arg1: memref<16x768xf32, #tpu.memory_space<vmem>>, %arg2: memref<768x256xbf16, #tpu.memory_space<vmem>>, %arg3: memref<1x256xf32, #tpu.memory_space<vmem>>, %arg4: memref<256x128xbf16, #tpu.memory_space<vmem>>, %arg5: memref<1x128xf32, #tpu.memory_space<vmem>>, %arg6: memref<128x128xbf16, #tpu.memory_space<vmem>>, %arg7: memref<1x128xf32, #tpu.memory_space<vmem>>, %arg8: memref<16x128xbf16, #tpu.memory_space<vmem>>) attributes {dimension_semantics = [#tpu.dimension_semantics<parallel>], iteration_bounds = array<i64: 1>, scalar_prefetch = 0 : i64, scratch_operands = 0 : i64, tpu.core_type = #tpu.core_type<tc>, window_params = [{transform_indices = @transform_0, window_bounds = array<i64: 16, 768>}, {pipeline_mode = #tpu.pipeline_mode<synchronous>, transform_indices = @transform_1, window_bounds = array<i64: 768, 256>}, {pipeline_mode = #tpu.pipeline_mode<synchronous>, transform_indices = @transform_2, window_bounds = array<i64: 1, 256>}, {pipeline_mode = #tpu.pipeline_mode<synchronous>, transform_indices = @transform_3, window_bounds = array<i64: 256, 128>}, {pipeline_mode = #tpu.pipeline_mode<synchronous>, transform_indices = @transform_4, window_bounds = array<i64: 1, 128>}, {pipeline_mode = #tpu.pipeline_mode<synchronous>, transform_indices = @transform_5, window_bounds = array<i64: 128, 128>}, {pipeline_mode = #tpu.pipeline_mode<synchronous>, transform_indices = @transform_6, window_bounds = array<i64: 1, 128>}, {transform_indices = @transform_7, window_bounds = array<i64: 16, 128>}]} {
    %c0 = arith.constant 0 : index
    %c0_0 = arith.constant 0 : index
    %0 = vector.load %arg1[%c0, %c0_0] : memref<16x768xf32, #tpu.memory_space<vmem>>, vector<16x768xf32>
    %1 = arith.truncf %0 : vector<16x768xf32> to vector<16x768xbf16>
    %c0_1 = arith.constant 0 : index
    %c0_2 = arith.constant 0 : index
    %2 = vector.load %arg2[%c0_1, %c0_2] : memref<768x256xbf16, #tpu.memory_space<vmem>>, vector<768x256xbf16>
    %cst = arith.constant dense<0.000000e+00> : vector<16x256xf32>
    %3 = tpu.matmul %1, %2, %cst {dimension_numbers = #tpu.dot_dimension_numbers<[1], [0], [0], [1], [0, 0, 1, 1], [], []>} : vector<16x768xbf16>, vector<768x256xbf16>, vector<16x256xf32> -> vector<16x256xf32>
    %c0_3 = arith.constant 0 : index
    %c0_4 = arith.constant 0 : index
    %4 = vector.load %arg3[%c0_3, %c0_4] : memref<1x256xf32, #tpu.memory_space<vmem>>, vector<1x256xf32>
    %5 = vector.broadcast %4 : vector<1x256xf32> to vector<16x256xf32>
    %6 = arith.addf %3, %5 : vector<16x256xf32>
    %cst_5 = arith.constant 0.000000e+00 : f32
    %7 = vector.broadcast %cst_5 : f32 to vector<16x256xf32>
    %8 = arith.maximumf %6, %7 : vector<16x256xf32>
    %9 = arith.truncf %8 : vector<16x256xf32> to vector<16x256xbf16>
    %c0_6 = arith.constant 0 : index
    %c0_7 = arith.constant 0 : index
    %10 = vector.load %arg4[%c0_6, %c0_7] : memref<256x128xbf16, #tpu.memory_space<vmem>>, vector<256x128xbf16>
    %cst_8 = arith.constant dense<0.000000e+00> : vector<16x128xf32>
    %11 = tpu.matmul %9, %10, %cst_8 {dimension_numbers = #tpu.dot_dimension_numbers<[1], [0], [0], [1], [0, 0, 1, 1], [], []>} : vector<16x256xbf16>, vector<256x128xbf16>, vector<16x128xf32> -> vector<16x128xf32>
    %c0_9 = arith.constant 0 : index
    %c0_10 = arith.constant 0 : index
    %12 = vector.load %arg5[%c0_9, %c0_10] : memref<1x128xf32, #tpu.memory_space<vmem>>, vector<1x128xf32>
    %13 = vector.broadcast %12 : vector<1x128xf32> to vector<16x128xf32>
    %14 = arith.addf %11, %13 : vector<16x128xf32>
    %cst_11 = arith.constant 0.000000e+00 : f32
    %15 = vector.broadcast %cst_11 : f32 to vector<16x128xf32>
    %16 = arith.maximumf %14, %15 : vector<16x128xf32>
    %17 = arith.truncf %16 : vector<16x128xf32> to vector<16x128xbf16>
    %c0_12 = arith.constant 0 : index
    %c0_13 = arith.constant 0 : index
    %18 = vector.load %arg6[%c0_12, %c0_13] : memref<128x128xbf16, #tpu.memory_space<vmem>>, vector<128x128xbf16>
    %cst_14 = arith.constant dense<0.000000e+00> : vector<16x128xf32>
    %19 = tpu.matmul %17, %18, %cst_14 {dimension_numbers = #tpu.dot_dimension_numbers<[1], [0], [0], [1], [0, 0, 1, 1], [], []>} : vector<16x128xbf16>, vector<128x128xbf16>, vector<16x128xf32> -> vector<16x128xf32>
    %c0_15 = arith.constant 0 : index
    %c0_16 = arith.constant 0 : index
    %20 = vector.load %arg7[%c0_15, %c0_16] : memref<1x128xf32, #tpu.memory_space<vmem>>, vector<1x128xf32>
    %21 = vector.broadcast %20 : vector<1x128xf32> to vector<16x128xf32>
    %22 = arith.addf %19, %21 : vector<16x128xf32>
    %23 = arith.truncf %22 : vector<16x128xf32> to vector<16x128xbf16>
    %c0_17 = arith.constant 0 : index
    %c0_18 = arith.constant 0 : index
    %24 = vector.load %arg8[%c0_17, %c0_18] : memref<16x128xbf16, #tpu.memory_space<vmem>>, vector<16x128xbf16>
    tpu.vector_store %arg8[%c0_17, %c0_18], %23 {strides = array<i32>} : memref<16x128xbf16, #tpu.memory_space<vmem>>, vector<16x128xbf16>,
    return
  }
  func.func @transform_0(%arg0: i32) -> (i32, i32) {
    %c0_i32 = arith.constant 0 : i32
    %c0_i32_0 = arith.constant 0 : i32
    return %arg0, %c0_i32 : i32, i32
  }
  func.func @transform_1(%arg0: i32) -> (i32, i32) {
    %c0_i32 = arith.constant 0 : i32
    %c0_i32_0 = arith.constant 0 : i32
    %c0_i32_1 = arith.constant 0 : i32
    return %c0_i32, %c0_i32_0 : i32, i32
  }
  func.func @transform_2(%arg0: i32) -> (i32, i32) {
    %c0_i32 = arith.constant 0 : i32
    %c0_i32_0 = arith.constant 0 : i32
    %c0_i32_1 = arith.constant 0 : i32
    return %c0_i32, %c0_i32_0 : i32, i32
  }
  func.func @transform_3(%arg0: i32) -> (i32, i32) {
    %c0_i32 = arith.constant 0 : i32
    %c0_i32_0 = arith.constant 0 : i32
    %c0_i32_1 = arith.constant 0 : i32
    return %c0_i32, %c0_i32_0 : i32, i32
  }
  func.func @transform_4(%arg0: i32) -> (i32, i32) {
    %c0_i32 = arith.constant 0 : i32
    %c0_i32_0 = arith.constant 0 : i32
    %c0_i32_1 = arith.constant 0 : i32
    return %c0_i32, %c0_i32_0 : i32, i32
  }
  func.func @transform_5(%arg0: i32) -> (i32, i32) {
    %c0_i32 = arith.constant 0 : i32
    %c0_i32_0 = arith.constant 0 : i32
    %c0_i32_1 = arith.constant 0 : i32
    return %c0_i32, %c0_i32_0 : i32, i32
  }
  func.func @transform_6(%arg0: i32) -> (i32, i32) {
    %c0_i32 = arith.constant 0 : i32
    %c0_i32_0 = arith.constant 0 : i32
    %c0_i32_1 = arith.constant 0 : i32
    return %c0_i32, %c0_i32_0 : i32, i32
  }
  func.func @transform_7(%arg0: i32) -> (i32, i32) {
    %c0_i32 = arith.constant 0 : i32
    %c0_i32_0 = arith.constant 0 : i32
    return %arg0, %c0_i32 : i32, i32
  }
}

</mosaic_0001>

<bundles_post_ra>
// kernel: _forward_impl.1
= control target key start
LH: loop header
LB: loop body
LE: loop exit
PB: predicated region body
PF: predicated region fallthrough
CT: control target
= control target key end

     0   :  { %12 = vsyncpa [#allocation3], 0  ;;  %s1700_s0 = inlined_call_operand.vmem [shape: f32[8,768], index: 0, kind: input, shape index: {}]   ;;  %s1701_s1 = inlined_call_operand.hbm [shape: bf16[768,256], index: 1, kind: input, shape index: {}]   ;;  %s1702_s2 = inlined_call_operand.vmem [shape: f32[1,256], index: 2, kind: input, shape index: {}]   ;;  %s1703_s3 = inlined_call_operand.hbm [shape: bf16[256,128], index: 3, kind: input, shape index: {}]   ;;  %s1704_s4 = inlined_call_operand.vmem [shape: f32[1,128], index: 4, kind: input, shape index: {}]   ;;  %s1705_s5 = inlined_call_operand.vmem [shape: bf16[128,128], index: 5, kind: input, shape index: {}]   ;;  %s1706_s6 = inlined_call_operand.vmem [shape: f32[1,128], index: 6, kind: input, shape index: {}]   ;;  %s1707_s7 = inlined_call_operand.vmem [shape: bf16[8,128], index: 7, kind: output, shape index: {}]  }
   0x1   :  { %13 = vsyncpa [#allocation5], 0  ;;  %s1556_s24 = smov [#allocation2]   ;;  %s1508_s28 = scalar_lea.hbm %s1701_s1, 12288 }
   0x2   :  { %s21_s25 = sshll.u32 %s1556_s24, 4  ;;  %p1509_p0 = scmp.ne.s32.totalorder %s1701_s1, %s1508_s28  ;;  %s22_s25 = int_to_ptr.vmem [resolvable:$true] %s21_s25 }
   0x3   :  { %p1512_p1 = scmp.lt.u32.totalorder %s1508_s28, %s1701_s1 }
   0x5   :  { %p1514_p2 = pnand %p1512_p1, %p1509_p0 }
   0x7   :  { %1517 = shalt.err (!%p1514_p2)
}
   0x8   :  { %s1518_s10 = scalar_lea.vmem %s22_s25, 12288  ;;  %p1523_p4 = scmp.lt.s32.totalorder %s22_s25, %s22_s25 }
   0x9   :  { %p1519_p3 = scmp.ne.s32.totalorder %s22_s25, %s1518_s10  ;;  %p1524_p5 = scmp.lt.s32.totalorder %s1518_s10, %s1518_s10 }
   0xb   :  { %p1525_p6 = por %p1524_p5, %p1523_p4 }
   0xd   :  { %p1526_p7 = pnand %p1525_p6, %p1519_p3 }
   0xf   :  { %1529 = shalt.err (!%p1526_p7)
}
  0x10   :  { %s1557_s11 = smov 128   ;;  %s1558_s12 = smov 8  }
  0x11   :  { %27 = dma.hbm_to_vmem [thread:$0]  %s1701_s1, 12288, %s22_s25, [#allocation3], %s1557_s11, %s1557_s11, %s1558_s12  }
  0x12   :  { %s1559_s15 = smov [#allocation4]   ;;  %s1530_s19 = scalar_lea.hbm %s1703_s3, 2048 }
  0x13   :  { %s35_s16 = sshll.u32 %s1559_s15, 4  ;;  %p1531_p8 = scmp.ne.s32.totalorder %s1703_s3, %s1530_s19  ;;  %s36_s16 = int_to_ptr.vmem [resolvable:$true] %s35_s16 }
  0x14   :  { %p1534_p9 = scmp.lt.u32.totalorder %s1530_s19, %s1703_s3 }
  0x16   :  { %p1536_p10 = pnand %p1534_p9, %p1531_p8 }
  0x18   :  { %1539 = shalt.err (!%p1536_p10)
}
  0x19   :  { %s1540_s24 = scalar_lea.vmem %s36_s16, 2048  ;;  %p1545_p12 = scmp.lt.s32.totalorder %s36_s16, %s36_s16 }
  0x1a   :  { %p1541_p11 = scmp.ne.s32.totalorder %s36_s16, %s1540_s24  ;;  %p1546_p13 = scmp.lt.s32.totalorder %s1540_s24, %s1540_s24 }
  0x1c   :  { %p1547_p0 = por %p1546_p13, %p1545_p12 }
  0x1e   :  { %p1548_p1 = pnand %p1547_p0, %p1541_p11 }
  0x20   :  { %1551 = shalt.err (!%p1548_p1)
}
  0x21   :  { %s1560_s1 = smov 64   ;;  %s1561_s25 = smov 4  }
  0x22   :  { %41 = dma.hbm_to_vmem [thread:$0]  %s1703_s3, 2048, %s36_s16, [#allocation5], %s1560_s1, %s1560_s1, %s1561_s25  }
  0x23   :  { %1552 = dma.done.wait [#allocation3], 12288  }
  0x24   :  { %1553 = vsyncadd [#allocation3], 4294955008 }
  0x25   :  { %1554 = dma.done.wait [#allocation5], 2048  }
  0x26   :  { %1555 = vsyncadd [#allocation5], 4294965248  ;;  %v1340_v0 = vld [vmem:[#allocation2 + $0x104] ss:$8 sps:$4 sm:$0xff]   ;;  %v1342_v1 = vld [vmem:[#allocation2 + $0x100] ss:$8 sps:$4 sm:$0xff]  }
  0x27   :  { %704 = vmatprep.subr.bf16.mxu0 %v1340_v0  ;;  %v1343_v2 = vld [vmem:[#allocation2 + $0x114] ss:$8 sps:$4 sm:$0xff]   ;;  %v1345_v3 = vld [vmem:[#allocation2 + $0x110] ss:$8 sps:$4 sm:$0xff]   ;;  %v1346_v4 = vld [vmem:[#allocation2 + $0x124] ss:$8 sps:$4 sm:$0xff]  }
  0x28   :  { %705 = vmatpush1.bf16.msra.mxu0 %v1342_v1  ;;  %v1348_v5 = vld [vmem:[#allocation2 + $0x120] ss:$8 sps:$4 sm:$0xff]   ;;  %v1349_v6 = vld [vmem:[#allocation2 + $0x134] ss:$8 sps:$4 sm:$0xff]   ;;  %v1351_v7 = vld [vmem:[#allocation2 + $0x130] ss:$8 sps:$4 sm:$0xff]  }
  0x29   :  { %706 = vmatprep.subr.bf16.mxu0 %v1343_v2  ;;  %v1352_v8 = vld [vmem:[#allocation2 + $0x144] ss:$8 sps:$4 sm:$0xff]   ;;  %v1354_v9 = vld [vmem:[#allocation2 + $0x140] ss:$8 sps:$4 sm:$0xff]   ;;  %v1355_v10 = vld [vmem:[#allocation2 + $0x154] ss:$8 sps:$4 sm:$0xff]  }
  0x2a   :  { %v1357_v11 = vld [vmem:[#allocation2 + $0x150] ss:$8 sps:$4 sm:$0xff]   ;;  %v1358_v12 = vld [vmem:[#allocation2 + $0x164] ss:$8 sps:$4 sm:$0xff]   ;;  %v1387_v14 = vld [vmem:[#allocation2] ss:$8 sps:$4 sm:$0xff]  }
  0x2b   :  { %v1385_v13 = vld [vmem:[#allocation2 + $0x4] ss:$8 sps:$4 sm:$0xff]   ;;  %v1360_v15 = vld [vmem:[#allocation2 + $0x160] ss:$8 sps:$4 sm:$0xff]   ;;  %v1361_v16 = vld [vmem:[#allocation2 + $0x174] ss:$8 sps:$4 sm:$0xff]  }
  0x2c   :  { %707 = vmatpush1.bf16.msra.mxu0 %v1345_v3  ;;  %661 = vmatprep.subr.bf16.mxu1 %v1385_v13  ;;  %v1391_v17 = vld [vmem:[#allocation2 + $0x14] ss:$8 sps:$4 sm:$0xff]   ;;  %v1393_v18 = vld [vmem:[#allocation2 + $0x10] ss:$8 sps:$4 sm:$0xff]   ;;  %v64_v20 = vld [vmem:[%s1700_s0 + $0x48] sm:$0xff]  ;;  %vm1563_vm0 = vmmov 0  }
  0x2d   :  { %708 = vmatprep.subr.bf16.mxu0 %v1346_v4  ;;  %662 = vmatpush1.bf16.msra.mxu1 %v1387_v14  ;;  %v58_v19 = vld [vmem:[%s1700_s0 + $0x18] sm:$0xff]  ;;  %v1397_v23 = vld [vmem:[#allocation2 + $0x24] ss:$8 sps:$4 sm:$0xff]   ;;  %v1399_v24 = vld [vmem:[#allocation2 + $0x20] ss:$8 sps:$4 sm:$0xff]  }
  0x2e   :  { %663 = vmatprep.subr.bf16.mxu1 %v1391_v17  ;;  %v70_v21 = vpack.c.bf16 %v64_v20, %v58_v19  ;;  %v1363_v22 = vld [vmem:[#allocation2 + $0x170] ss:$8 sps:$4 sm:$0xff]   ;;  %v1364_v25 = vld [vmem:[#allocation2 + $0x184] ss:$8 sps:$4 sm:$0xff]   ;;  %v1366_v26 = vld [vmem:[#allocation2 + $0x180] ss:$8 sps:$4 sm:$0xff]  }
  0x2f   :  { %v1403_v27 = vld [vmem:[#allocation2 + $0x34] ss:$8 sps:$4 sm:$0xff]   ;;  %v1405_v29 = vld [vmem:[#allocation2 + $0x30] ss:$8 sps:$4 sm:$0xff]   ;;  %v1409_v30 = vld [vmem:[#allocation2 + $0x44] ss:$8 sps:$4 sm:$0xff]  }
  0x30   :  { %709 = vmatpush1.bf16.msra.mxu0 %v1348_v5  ;;  %736 = vmatprep.mubr.bf16.mxu0 %v70_v21  ;;  %v1367_v28 = vld [vmem:[#allocation2 + $0x194] ss:$8 sps:$4 sm:$0xff]   ;;  %v1369_v31 = vld [vmem:[#allocation2 + $0x190] ss:$8 sps:$4 sm:$0xff]   ;;  %v1370_v32 = vld [vmem:[#allocation2 + $0x1a4] ss:$8 sps:$4 sm:$0xff]  }
  0x31   :  { %710 = vmatprep.subr.bf16.mxu0 %v1349_v6  ;;  %664 = vmatpush1.bf16.msra.mxu1 %v1393_v18  ;;  %v1411_v33 = vld [vmem:[#allocation2 + $0x40] ss:$8 sps:$4 sm:$0xff]   ;;  %v1415_v34 = vld [vmem:[#allocation2 + $0x54] ss:$8 sps:$4 sm:$0xff]   ;;  %v1417_v37 = vld [vmem:[#allocation2 + $0x50] ss:$8 sps:$4 sm:$0xff]  }
  0x32   :  { %665 = vmatprep.subr.bf16.mxu1 %v1397_v23  ;;  %v1372_v35 = vld [vmem:[#allocation2 + $0x1a0] ss:$8 sps:$4 sm:$0xff]   ;;  %v1373_v36 = vld [vmem:[#allocation2 + $0x1b4] ss:$8 sps:$4 sm:$0xff]   ;;  %v1421_v38 = vld [vmem:[#allocation2 + $0x64] ss:$8 sps:$4 sm:$0xff]  }
  0x33   :  { %v1375_v39 = vld [vmem:[#allocation2 + $0x1b0] ss:$8 sps:$4 sm:$0xff]   ;;  %v1376_v40 = vld [vmem:[#allocation2 + $0x1c4] ss:$8 sps:$4 sm:$0xff]   ;;  %v1423_v41 = vld [vmem:[#allocation2 + $0x60] ss:$8 sps:$4 sm:$0xff]  }
  0x34   :  { %711 = vmatpush1.bf16.msra.mxu0 %v1351_v7  ;;  %v1427_v42 = vld [vmem:[#allocation2 + $0x74] ss:$8 sps:$4 sm:$0xff]   ;;  %v1378_v43 = vld [vmem:[#allocation2 + $0x1c0] ss:$8 sps:$4 sm:$0xff]   ;;  %v1429_v45 = vld [vmem:[#allocation2 + $0x70] ss:$8 sps:$4 sm:$0xff]  }
  0x35   :  { %712 = vmatprep.subr.bf16.mxu0 %v1352_v8  ;;  %666 = vmatpush1.bf16.msra.mxu1 %v1399_v24  ;;  %v1379_v44 = vld [vmem:[#allocation2 + $0x1d4] ss:$8 sps:$4 sm:$0xff]   ;;  %v1433_v46 = vld [vmem:[#allocation2 + $0x84] ss:$8 sps:$4 sm:$0xff]   ;;  %v1381_v47 = vld [vmem:[#allocation2 + $0x1d0] ss:$8 sps:$4 sm:$0xff]  }
  0x36   :  { %667 = vmatprep.subr.bf16.mxu1 %v1403_v27  ;;  %v1382_v48 = vld [vmem:[#allocation2 + $0x1e4] ss:$8 sps:$4 sm:$0xff]   ;;  %v1435_v49 = vld [vmem:[#allocation2 + $0x80] ss:$8 sps:$4 sm:$0xff]   ;;  %v1439_v50 = vld [vmem:[#allocation2 + $0x94] ss:$8 sps:$4 sm:$0xff]  }
  0x37   :  { %v1384_v51 = vld [vmem:[#allocation2 + $0x1e0] ss:$8 sps:$4 sm:$0xff]   ;;  %v1388_v52 = vld [vmem:[#allocation2 + $0x1f4] ss:$8 sps:$4 sm:$0xff]   ;;  %v1441_v53 = vld [vmem:[#allocation2 + $0x90] ss:$8 sps:$4 sm:$0xff]  }
  0x38   :  { %713 = vmatpush1.bf16.msra.mxu0 %v1354_v9  ;;  %v1445_v54 = vld [vmem:[#allocation2 + $0xa4] ss:$8 sps:$4 sm:$0xff]   ;;  %v1390_v55 = vld [vmem:[#allocation2 + $0x1f0] ss:$8 sps:$4 sm:$0xff]   ;;  %v1447_v59 = vld [vmem:[#allocation2 + $0xa0] ss:$8 sps:$4 sm:$0xff]  }
  0x39   :  { %714 = vmatprep.subr.bf16.mxu0 %v1355_v10  ;;  %668 = vmatpush1.bf16.msra.mxu1 %v1405_v29  ;;  %v1396_v56 = vld [vmem:[#allocation2 + $0x204] ss:$8 sps:$4 sm:$0xff]   ;;  %v57_v57 = vld [vmem:[%s1700_s0 + $0x10] sm:$0xff]  ;;  %v1394_v61 = vld [vmem:[#allocation2 + $0x200] ss:$8 sps:$4 sm:$0xff]  }
  0x3a   :  { %669 = vmatprep.subr.bf16.mxu1 %v1409_v30  ;;  %v63_v58 = vld [vmem:[%s1700_s0 + $0x40] sm:$0xff]  ;;  %v1451_v60 = vld [vmem:[#allocation2 + $0xb4] ss:$8 sps:$4 sm:$0xff]   ;;  %v1453_v0 = vld [vmem:[#allocation2 + $0xb0] ss:$8 sps:$4 sm:$0xff]  }
  0x3b   :  { %v69_v62 = vpack.c.bf16 %v63_v58, %v57_v57  ;;  %v1402_v63 = vld [vmem:[#allocation2 + $0x214] ss:$8 sps:$4 sm:$0xff]   ;;  %v1457_v1 = vld [vmem:[#allocation2 + $0xc4] ss:$8 sps:$4 sm:$0xff]   ;;  %v1400_v5 = vld [vmem:[#allocation2 + $0x210] ss:$8 sps:$4 sm:$0xff]  }
  0x3c   :  { %715 = vmatpush1.bf16.msra.mxu0 %v1357_v11  ;;  %v56_v2 = vld [vmem:[%s1700_s0 + $0x8] sm:$0xff]  ;;  %v62_v3 = vld [vmem:[%s1700_s0 + $0x38] sm:$0xff]  ;;  %v61_v23 = vld [vmem:[%s1700_s0 + $0x30] sm:$0xff] }
  0x3d   :  { %716 = vmatprep.subr.bf16.mxu0 %v1358_v12  ;;  %670 = vmatpush1.bf16.msra.mxu1 %v1411_v33  ;;  %v68_v4 = vpack.c.bf16 %v62_v3, %v56_v2  ;;  %v60_v6 = vld [vmem:[%s1700_s0 + $0x28] sm:$0xff]  ;;  %v66_v9 = vld [vmem:[%s1700_s0 + $0x58] sm:$0xff]  ;;  %v1485_v27 = vld [vmem:[#allocation4] sm:$0xff]   ;;  %v1562_v2 = vmov 0.0  }
  0x3e   :  { %671 = vmatprep.subr.bf16.mxu1 %v1415_v34  ;;  %v1408_v7 = vld [vmem:[#allocation2 + $0x224] ss:$8 sps:$4 sm:$0xff]   ;;  %v1459_v8 = vld [vmem:[#allocation2 + $0xc0] ss:$8 sps:$4 sm:$0xff]   ;;  %v1463_v10 = vld [vmem:[#allocation2 + $0xd4] ss:$8 sps:$4 sm:$0xff]   ;;  %v72_v11 = vpack.c.bf16 %v66_v9, %v60_v6 }
  0x3f   :  { %v1406_v12 = vld [vmem:[#allocation2 + $0x220] ss:$8 sps:$4 sm:$0xff]   ;;  %693 = vmatprep.mubr.bf16.mxu1 %v68_v4  ;;  %v1414_v13 = vld [vmem:[#allocation2 + $0x234] ss:$8 sps:$4 sm:$0xff]   ;;  %v1465_v14 = vld [vmem:[#allocation2 + $0xd0] ss:$8 sps:$4 sm:$0xff]  }
  0x40   :  { %717 = vmatpush1.bf16.msra.mxu0 %v1360_v15  ;;  %v1469_v15 = vld [vmem:[#allocation2 + $0xe4] ss:$8 sps:$4 sm:$0xff]   ;;  %v1471_v18 = vld [vmem:[#allocation2 + $0xe0] ss:$8 sps:$4 sm:$0xff]   ;;  %v1475_v19 = vld [vmem:[#allocation2 + $0xf4] ss:$8 sps:$4 sm:$0xff]  }
  0x41   :  { %718 = vmatprep.subr.bf16.mxu0 %v1361_v16  ;;  %672 = vmatpush1.bf16.msra.mxu1 %v1417_v37  ;;  %v1412_v16 = vld [vmem:[#allocation2 + $0x230] ss:$8 sps:$4 sm:$0xff]   ;;  %v1420_v17 = vld [vmem:[#allocation2 + $0x244] ss:$8 sps:$4 sm:$0xff]   ;;  %v1418_v20 = vld [vmem:[#allocation2 + $0x240] ss:$8 sps:$4 sm:$0xff]  }
  0x42   :  { %673 = vmatprep.subr.bf16.mxu1 %v1421_v38  ;;  %v1477_v21 = vld [vmem:[#allocation2 + $0xf0] ss:$8 sps:$4 sm:$0xff]   ;;  %v1426_v24 = vld [vmem:[#allocation2 + $0x254] ss:$8 sps:$4 sm:$0xff]   ;;  %v1486_v30 = vld [vmem:[#allocation4 + $0x48] sm:$0xff]  }
  0x43   :  { %v1438_v33 = vld [vmem:[#allocation2 + $0x274] ss:$8 sps:$4 sm:$0xff]   ;;  %v1444_v37 = vld [vmem:[#allocation2 + $0x284] ss:$8 sps:$4 sm:$0xff]  }
  0x44   :  { %719 = vmatpush1.bf16.msra.mxu0 %v1363_v22  ;;  %v55_v22 = vld [vmem:[%s1700_s0] sm:$0xff]  ;;  %v1488_v34 = vld [vmem:[#allocation4 + $0x50] sm:$0xff]   ;;  %v1490_v38 = vld [vmem:[#allocation4 + $0x58] sm:$0xff]  }
  0x45   :  { %720 = vmatprep.subr.bf16.mxu0 %v1364_v25  ;;  %674 = vmatpush1.bf16.msra.mxu1 %v1423_v41  ;;  %v1484_v25 = vld [vmem:[#allocation4 + $0x40] sm:$0xff]   ;;  %v67_v29 = vpack.c.bf16 %v61_v23, %v55_v22  ;;  %v1450_v41 = vld [vmem:[#allocation2 + $0x294] ss:$8 sps:$4 sm:$0xff]  }
  0x46   :  { %675 = vmatprep.subr.bf16.mxu1 %v1427_v42  ;;  %v1448_v42 = vld [vmem:[#allocation2 + $0x290] ss:$8 sps:$4 sm:$0xff]   ;;  %v1492_v58 = vld [vmem:[#allocation4 + $0x60] sm:$0xff]  }
  0x48   :  { %721 = vmatpush1.bf16.msra.mxu0 %v1366_v26  ;;  %v1424_v26 = vld [vmem:[#allocation2 + $0x250] ss:$8 sps:$4 sm:$0xff]  }
  0x49   :  { %722 = vmatprep.subr.bf16.mxu0 %v1367_v28  ;;  %676 = vmatpush1.bf16.msra.mxu1 %v1429_v45  ;;  %v1432_v28 = vld [vmem:[#allocation2 + $0x264] ss:$8 sps:$4 sm:$0xff]   ;;  %v1462_v45 = vld [vmem:[#allocation2 + $0x2b4] ss:$8 sps:$4 sm:$0xff]  }
  0x4a   :  { %677 = vmatprep.subr.bf16.mxu1 %v1433_v46  ;;  %v1460_v46 = vld [vmem:[#allocation2 + $0x2b0] ss:$8 sps:$4 sm:$0xff]  }
  0x4c   :  { %723 = vmatpush1.bf16.msra.mxu0 %v1369_v31  ;;  %v1430_v31 = vld [vmem:[#allocation2 + $0x260] ss:$8 sps:$4 sm:$0xff]  }
  0x4d   :  { %724 = vmatprep.subr.bf16.mxu0 %v1370_v32  ;;  %678 = vmatpush1.bf16.msra.mxu1 %v1435_v49  ;;  %v1487_v32 = vld [vmem:[#allocation4 + $0x8] sm:$0xff]   ;;  %v1474_v49 = vld [vmem:[#allocation2 + $0x2d4] ss:$8 sps:$4 sm:$0xff]  }
  0x4e   :  { %679 = vmatprep.subr.bf16.mxu1 %v1439_v50  ;;  %v1472_v50 = vld [vmem:[#allocation2 + $0x2d0] ss:$8 sps:$4 sm:$0xff]  }
  0x50   :  { %725 = vmatpush1.bf16.msra.mxu0 %v1372_v35  ;;  %v1436_v35 = vld [vmem:[#allocation2 + $0x270] ss:$8 sps:$4 sm:$0xff]  }
  0x51   :  { %726 = vmatprep.subr.bf16.mxu0 %v1373_v36  ;;  %680 = vmatpush1.bf16.msra.mxu1 %v1441_v53  ;;  %v1489_v36 = vld [vmem:[#allocation4 + $0x10] sm:$0xff]  }
  0x52   :  { %681 = vmatprep.subr.bf16.mxu1 %v1445_v54  ;;  %v1483_v53 = vld [vmem:[#allocation2 + $0x2f4] ss:$8 sps:$4 sm:$0xff]   ;;  %v1481_v54 = vld [vmem:[#allocation2 + $0x2f0] ss:$8 sps:$4 sm:$0xff]  }
  0x54   :  { %727 = vmatpush1.bf16.msra.mxu0 %v1375_v39  ;;  %v1442_v39 = vld [vmem:[#allocation2 + $0x280] ss:$8 sps:$4 sm:$0xff]  }
  0x55   :  { %728 = vmatprep.subr.bf16.mxu0 %v1376_v40  ;;  %682 = vmatpush1.bf16.msra.mxu1 %v1447_v59  ;;  %v1491_v40 = vld [vmem:[#allocation4 + $0x18] sm:$0xff]   ;;  %v1493_v59 = vld [vmem:[#allocation4 + $0x20] sm:$0xff]  }
  0x56   :  { %683 = vmatprep.subr.bf16.mxu1 %v1451_v60  ;;  %v1494_v60 = vld [vmem:[#allocation4 + $0x68] sm:$0xff]  }
  0x58   :  { %729 = vmatpush1.bf16.msra.mxu0 %v1378_v43  ;;  %v1456_v43 = vld [vmem:[#allocation2 + $0x2a4] ss:$8 sps:$4 sm:$0xff]  }
  0x59   :  { %730 = vmatprep.subr.bf16.mxu0 %v1379_v44  ;;  %684 = vmatpush1.bf16.msra.mxu1 %v1453_v0  ;;  %v1454_v44 = vld [vmem:[#allocation2 + $0x2a0] ss:$8 sps:$4 sm:$0xff]   ;;  %v1498_v0 = vld [vmem:[#allocation4 + $0x78] sm:$0xff]  }
  0x5a   :  { %685 = vmatprep.subr.bf16.mxu1 %v1457_v1  ;;  %v1499_v1 = vld [vmem:[#allocation4 + $0x38] sm:$0xff]  }
  0x5c   :  { %731 = vmatpush1.bf16.msra.mxu0 %v1381_v47  ;;  %v1468_v47 = vld [vmem:[#allocation2 + $0x2c4] ss:$8 sps:$4 sm:$0xff]  }
  0x5d   :  { %732 = vmatprep.subr.bf16.mxu0 %v1382_v48  ;;  %686 = vmatpush1.bf16.msra.mxu1 %v1459_v8  ;;  %v1466_v48 = vld [vmem:[#allocation2 + $0x2c0] ss:$8 sps:$4 sm:$0xff]  }
  0x5e   :  { %687 = vmatprep.subr.bf16.mxu1 %v1463_v10  ;;  %v169_v10 = vld [vmem:[%s1702_s2] sm:$0x3] }
  0x60   :  { %733 = vmatpush1.bf16.msra.mxu0 %v1384_v51  ;;  %v1480_v51 = vld [vmem:[#allocation2 + $0x2e4] ss:$8 sps:$4 sm:$0xff]  }
  0x61   :  { %734 = vmatprep.subr.bf16.mxu0 %v1388_v52  ;;  %688 = vmatpush1.bf16.msra.mxu1 %v1465_v14  ;;  %v1478_v52 = vld [vmem:[#allocation2 + $0x2e0] ss:$8 sps:$4 sm:$0xff]  }
  0x62   :  { %689 = vmatprep.subr.bf16.mxu1 %v1469_v15 }
  0x64   :  { %735 = vmatpush1.bf16.msra.mxu0 %v1390_v55  ;;  %v59_v55 = vld [vmem:[%s1700_s0 + $0x20] sm:$0xff] }
  0x65   :  { %747 = vmatprep.subr.bf16.mxu0 %v1396_v56  ;;  %690 = vmatpush1.bf16.msra.mxu1 %v1471_v18  ;;  %v65_v56 = vld [vmem:[%s1700_s0 + $0x50] sm:$0xff] }
  0x66   :  { %691 = vmatprep.subr.bf16.mxu1 %v1475_v19  ;;  %v71_v57 = vpack.c.bf16 %v65_v56, %v59_v55 }
  0x67   :  { %737 = vmatmul.mubr.bf16.vlgmr.msra.gmra.mrb[0].mxu0 %v69_v62  ;;  %v1496_v62 = vld [vmem:[#allocation4 + $0x70] sm:$0xff]  }
  0x68   :  { %748 = vmatpush1.bf16.msra.mxu0 %v1394_v61  ;;  %779 = vmatprep.mubr.bf16.mxu0 %v72_v11  ;;  %v1495_v61 = vld [vmem:[#allocation4 + $0x28] sm:$0xff]  }
  0x69   :  { %749 = vmatprep.subr.bf16.mxu0 %v1402_v63  ;;  %692 = vmatpush1.bf16.msra.mxu1 %v1477_v21  ;;  %v1497_v63 = vld [vmem:[#allocation4 + $0x30] sm:$0xff]  }
  0x6a   :  { %1269 = vmatprep.subr.bf16.mxu1 %v1484_v25 }
  0x6c   :  { %750 = vmatpush1.bf16.msra.mxu0 %v1400_v5  ;;  %694 = vmatmul.mubr.bf16.vlgmr.msra.gmra.mrb[0].mxu1 %v67_v29 }
  0x6d   :  { %751 = vmatprep.subr.bf16.mxu0 %v1408_v7  ;;  %1270 = vmatpush3.bf16.msra.mxu1 %v1485_v27  ;;  %v171_v7 = vlaneseq }
  0x6e   :  { %1271 = vmatprep.subr.bf16.mxu1 %v1486_v30 }
  0x6f   :  { %v172_v8 = vshrl.u32 %v171_v7, 7 }
  0x70   :  { %752 = vmatpush1.bf16.msra.mxu0 %v1406_v12 }
  0x71   :  { %753 = vmatprep.subr.bf16.mxu0 %v1414_v13  ;;  %1272 = vmatpush3.bf16.msra.mxu1 %v1487_v32  ;;  %v173_v9 = vsub.s32 0, %v172_v8  ;;  %v177_v11 = vsub.s32 1, %v172_v8  ;;  %v1500_v32 = vld [vmem:[%s1705_s5] sm:$0xff]  }
  0x72   :  { %1273 = vmatprep.subr.bf16.mxu1 %v1488_v34  ;;  %v1502_v34 = vld [vmem:[%s1705_s5 + $0x10] sm:$0xff]  }
  0x73   :  { %v174_v12 = vrot.slane %v169_v10, %v173_v9  ;;  %v178_v13 = vrot.slane %v169_v10, %v177_v11 }
  0x74   :  { %754 = vmatpush1.bf16.msra.mxu0 %v1412_v16 }
  0x75   :  { %755 = vmatprep.subr.bf16.mxu0 %v1420_v17  ;;  %1274 = vmatpush3.bf16.msra.mxu1 %v1489_v36  ;;  %v1504_v36 = vld [vmem:[%s1705_s5 + $0x20] sm:$0xff]  }
  0x76   :  { %1275 = vmatprep.subr.bf16.mxu1 %v1490_v38  ;;  %v1506_v38 = vld [vmem:[%s1705_s5 + $0x30] sm:$0xff]  }
  0x78   :  { %756 = vmatpush1.bf16.msra.mxu0 %v1418_v20 }
  0x79   :  { %757 = vmatprep.subr.bf16.mxu0 %v1426_v24  ;;  %1276 = vmatpush3.bf16.msra.mxu1 %v1491_v40 }
  0x7a   :  { %1277 = vmatprep.subr.bf16.mxu1 %v1492_v58 }
  0x7c   :  { %758 = vmatpush1.bf16.msra.mxu0 %v1424_v26 }
  0x7d   :  { %759 = vmatprep.subr.bf16.mxu0 %v1432_v28  ;;  %1278 = vmatpush3.bf16.msra.mxu1 %v1493_v59 }
  0x7e   :  { %1279 = vmatprep.subr.bf16.mxu1 %v1494_v60 }
  0x80   :  { %760 = vmatpush1.bf16.msra.mxu0 %v1430_v31 }
  0x81   :  { %761 = vmatprep.subr.bf16.mxu0 %v1438_v33  ;;  %1280 = vmatpush3.bf16.msra.mxu1 %v1495_v61  ;;  %v1501_v33 = vld [vmem:[%s1705_s5 + $0x8] sm:$0xff]  }
  0x82   :  { %1281 = vmatprep.subr.bf16.mxu1 %v1496_v62 }
  0x84   :  { %762 = vmatpush1.bf16.msra.mxu0 %v1436_v35  ;;  %v1503_v35 = vld [vmem:[%s1705_s5 + $0x18] sm:$0xff]  }
  0x85   :  { %763 = vmatprep.subr.bf16.mxu0 %v1444_v37  ;;  %1282 = vmatpush3.bf16.msra.mxu1 %v1497_v63  ;;  %v1505_v37 = vld [vmem:[%s1705_s5 + $0x28] sm:$0xff]  }
  0x86   :  { %1283 = vmatprep.subr.bf16.mxu1 %v1498_v0 }
  0x88   :  { %764 = vmatpush1.bf16.msra.mxu0 %v1442_v39  ;;  %v1507_v39 = vld [vmem:[%s1705_s5 + $0x38] sm:$0xff]  }
  0x89   :  { %765 = vmatprep.subr.bf16.mxu0 %v1450_v41  ;;  %1284 = vmatpush3.bf16.msra.mxu1 %v1499_v1  ;;  %v1234_v41 = vld [vmem:[%s1704_s4] ss:$0 sm:$0xff] }
  0x8a   :  { %1300 = vmatprep.subr.bf16.mxu1 %v1562_v2 }
  0x8c   :  { %766 = vmatpush1.bf16.msra.mxu0 %v1448_v42 }
  0x8d   :  { %767 = vmatprep.subr.bf16.mxu0 %v1456_v43 }
  0x90   :  { %768 = vmatpush1.bf16.msra.mxu0 %v1454_v44 }
  0x91   :  { %769 = vmatprep.subr.bf16.mxu0 %v1462_v45 }
  0x94   :  { %770 = vmatpush1.bf16.msra.mxu0 %v1460_v46 }
  0x95   :  { %771 = vmatprep.subr.bf16.mxu0 %v1468_v47 }
  0x98   :  { %772 = vmatpush1.bf16.msra.mxu0 %v1466_v48 }
  0x99   :  { %773 = vmatprep.subr.bf16.mxu0 %v1474_v49 }
  0x9c   :  { %774 = vmatpush1.bf16.msra.mxu0 %v1472_v50 }
  0x9d   :  { %775 = vmatprep.subr.bf16.mxu0 %v1480_v51 }
  0xa0   :  { %776 = vmatpush1.bf16.msra.mxu0 %v1478_v52  ;;  %v1251_v52 = vld [vmem:[%s1706_s6] ss:$0 sm:$0xff] }
  0xa1   :  { %777 = vmatprep.subr.bf16.mxu0 %v1483_v53 }
  0xa4   :  { %778 = vmatpush1.bf16.msra.mxu0 %v1481_v54 }
  0xa7   :  { %780 = vmatmul.mubr.bf16.vlgmr.msra.gmra.mrb[0].mxu0 %v71_v57 }
 0x13f   :  { %v695_v3 = vpop.f32.mrb[0].mxu1 }
 0x140   :  { %v697_v4 = vpop.f32.mrb[1].mxu1  ;;  %v696_v14 = vadd.f32 %v695_v3, %v174_v12 }
 0x141   :  { %v699_v5 = vpop.f32.mrb[2].mxu1  ;;  %v698_v15 = vadd.f32 %v697_v4, %v178_v13 }
 0x142   :  { %v701_v6 = vpop.f32.mrb[3].mxu1  ;;  %v700_v17 = vadd.f32 %v699_v5, %v174_v12 }
 0x143   :  { %v702_v20 = vadd.f32 %v701_v6, %v178_v13 }
 0x17a   :  { %v781_v16 = vpop.f32.mrb[0].mxu0 }
 0x17b   :  { %v1321_v18 = vadd.f32 %v781_v16, %v696_v14  ;;  %v783_v19 = vpop.f32.mrb[1].mxu0 }
 0x17c   :  { %v1323_v21 = vadd.f32 %v783_v19, %v698_v15  ;;  %v785_v22 = vpop.f32.mrb[2].mxu0 }
 0x17d   :  { %v1325_v23 = vadd.f32 %v785_v22, %v700_v17  ;;  %v787_v24 = vpop.f32.mrb[3].mxu0  ;;  %v790_v26 = vmax.f32 %v1321_v18, 0.0 }
 0x17e   :  { %v1327_v25 = vadd.f32 %v787_v24, %v702_v20  ;;  %v791_v28 = vmax.f32 %v1323_v21, 0.0 }
 0x17f   :  { %v792_v27 = vmax.f32 %v1325_v23, 0.0 }
 0x180   :  { %v793_v29 = vmax.f32 %v1327_v25, 0.0 }
 0x181   :  { %v794_v30 = vpack.c.bf16 %v792_v27, %v790_v26 }
 0x182   :  { %v795_v31 = vpack.c.bf16 %v793_v29, %v791_v28 }
 0x184   :  { %963 = vmatprep.mubr.bf16.mxu1 %v795_v31 }
 0x185   :  { %964 = vmatmul.mubr.bf16.vlgmr.msra.gmra.mrb[4].mxu1 %v794_v30 }
 0x186   :  { %1301 = vmatpush3.bf16.msra.mxu1 %v1500_v32  ;;  %1316 = vmatprep.mubr.msk.bf16.mxu1 %vm1563_vm0, %v1562_v2 }
 0x187   :  { %1302 = vmatprep.subr.bf16.mxu1 %v1562_v2 }
 0x18a   :  { %1303 = vmatpush3.bf16.msra.mxu1 %v1501_v33 }
 0x18b   :  { %1304 = vmatprep.subr.bf16.mxu1 %v1562_v2 }
 0x18e   :  { %1305 = vmatpush3.bf16.msra.mxu1 %v1502_v34 }
 0x18f   :  { %1306 = vmatprep.subr.bf16.mxu1 %v1562_v2 }
 0x192   :  { %1307 = vmatpush3.bf16.msra.mxu1 %v1503_v35 }
 0x193   :  { %1308 = vmatprep.subr.bf16.mxu1 %v1562_v2 }
 0x196   :  { %1309 = vmatpush3.bf16.msra.mxu1 %v1504_v36 }
 0x197   :  { %1310 = vmatprep.subr.bf16.mxu1 %v1562_v2 }
 0x19a   :  { %1311 = vmatpush3.bf16.msra.mxu1 %v1505_v37 }
 0x19b   :  { %1312 = vmatprep.subr.bf16.mxu1 %v1562_v2 }
 0x19e   :  { %1313 = vmatpush3.bf16.msra.mxu1 %v1506_v38 }
 0x19f   :  { %1314 = vmatprep.subr.bf16.mxu1 %v1562_v2 }
 0x1a2   :  { %1315 = vmatpush3.bf16.msra.mxu1 %v1507_v39 }
 0x258   :  { %v1285_v40 = vpop.f32.mrb[4].mxu1 }
 0x259   :  { %v1286_v42 = vpop.f32.mrb[5].mxu1 }
 0x25a   :  { %v1287_v43 = vadd.f32 %v1286_v42, %v1285_v40  ;;  %v1288_v44 = vpop.f32.mrb[6].mxu1 }
 0x25b   :  { %v1289_v45 = vpop.f32.mrb[7].mxu1 }
 0x25c   :  { %v966_v46 = vadd.f32 %v1287_v43, %v1234_v41  ;;  %v1290_v47 = vadd.f32 %v1289_v45, %v1288_v44 }
 0x25e   :  { %v969_v48 = vadd.f32 %v1290_v47, %v1234_v41  ;;  %v972_v49 = vmax.f32 %v966_v46, 0.0 }
 0x260   :  { %v973_v50 = vmax.f32 %v969_v48, 0.0 }
 0x262   :  { %v974_v51 = vpack.c.bf16 %v973_v50, %v972_v49 }
 0x264   :  { %1317 = vmatmul.mubr.bf16.vlgmr.msra.gmra.mrb[8].mxu1 %v974_v51 }
 0x337   :  { %v1080_v53 = vpop.f32.mrb[8].mxu1 }
 0x338   :  { %v1318_v54 = vpop.f32.mrb[9].mxu1  ;;  %v1081_v56 = vadd.f32 %v1251_v52, %v1080_v53 }
 0x339   :  { %v1083_v55 = vpop.f32.mrb[10].mxu1 }
 0x33a   :  { %v1084_v57 = vadd.f32 %v1251_v52, %v1083_v55  ;;  %v1319_v58 = vpop.f32.mrb[11].mxu1 }
 0x33c   :  { %v1267_v59 = vpack.c.bf16 %v1084_v57, %v1081_v56 }
 0x33e   :  { %1268 = vst [vmem:[#allocation6] sm:$0xff] %v1267_v59  }
 0x345   :  { %v1114_v60 = vld [vmem:[#allocation6] sm:$0xf] }
 0x346   :  { %1115 = vst [vmem:[%s1707_s7] sm:$0xf] %v1114_v60 }
 0x347   :  { %1132 = vsyncpa [#allocation3], 1 }
 0x348   :  { %1133 = vsyncpa [#allocation5], 1 }

</bundles_post_ra>
